<compile_context>
chip_gen: v6e
topology: v6e:2x2x1
jax: 0.10.0
libtpu: 0.0.40
codegen_flags: <defaults>
</compile_context>

<pallas_src>
import functools

import jax
import jax.numpy as jnp
from jax.experimental import pallas as pl
from jax.experimental.pallas import tpu as pltpu


def st_gcn_block_kernel(x_ref, Abd_ref, Wg_ref, addg_ref, Wt_ref, Wr_ref,
                        addo_ref, o_ref, *, T, V, mxu_dtype):
    NB, C_in, TV = x_ref.shape
    K = Abd_ref.shape[0]
    C_out = o_ref.shape[1]
    KT = Wt_ref.shape[1] // C_out
    pad = (KT - 1) // 2

    Wt = Wt_ref[...]          # (C_out, KT*C_out)  folded BN2 scale, mxu dtype
    Wr = Wr_ref[...]          # (C_out, C_in)      folded residual BN scale, mxu dtype
    add_g = addg_ref[...]     # (C_out, TV) f32: BN1 shift + conv-bias-through-A (pre-scaled)
    add_o = addo_ref[...]     # (C_out, TV) f32: BN2 shift + tconv bias + residual bias/shift

    # lane index (0..TV-1) -> used to zero the rows that wrapped around in the
    # temporal roll (t outside [0, T)).
    lane = jax.lax.broadcasted_iota(jnp.int32, (1, TV), 1)

    for i in range(NB):                                   # small static batch tile, unrolled
        x2 = x_ref[i]                                      # (C_in, TV), mxu dtype

        # ---- graph conv: apply block-diag kron(I_T, A_k) first (full 128-lane
        #      matmuls, contracting C_in < C_out), then the tiny channel mix.
        #      BN1 scale and the conv-bias-through-A term are folded on host.
        #      (C_in=4 rows would make a stacked form sublane-unaligned, so the
        #      K channel-mix matmuls are accumulated instead.)
        g = add_g
        for k in range(K):
            xA_k = jnp.dot(x2, Abd_ref[k], preferred_element_type=jnp.float32)
            g = g + jnp.dot(Wg_ref[k], xA_k.astype(mxu_dtype),
                            preferred_element_type=jnp.float32)
        y = jnp.maximum(g, 0.0)                            # ReLU (BN1 already folded)

        # ---- temporal conv: shift by dt in T == shift by dt*V lanes. Use XLU
        #      roll + edge masks and fuse all KT taps into one matmul
        #      (C_out, KT*C_out) x (KT*C_out, TV). BN2 scale folded into Wt.
        taps = []
        for dt in range(KT):
            d = dt - pad
            if d == 0:
                s = y
            else:
                s = pltpu.roll(y, shift=(-d * V) % TV, axis=1)   # out[:, t] = y[:, t+d]
                if d > 0:
                    s = jnp.where(lane < (T - d) * V, s, 0.0)
                else:
                    s = jnp.where(lane >= (-d) * V, s, 0.0)
            taps.append(s)
        y_st = jnp.concatenate(taps, axis=0).astype(mxu_dtype)  # (KT*C_out, TV), 8-row aligned
        tout = jnp.dot(Wt, y_st, preferred_element_type=jnp.float32)

        # ---- residual 1x1 conv (BN folded) + final ReLU; lane-dense store.
        r = jnp.dot(Wr, x2, preferred_element_type=jnp.float32)
        o_ref[i] = jnp.maximum(tout + r + add_o, 0.0).astype(o_ref.dtype)


def _pack_params(A, p, T, mxu_dtype):
    """Host-side folding of BN affines / biases + block-diagonal adjacency."""
    K, C_out, C_in = p["Wg"].shape
    KT = p["Wt"].shape[0]
    V = A.shape[-1]
    TV = T * V
    s1, h1 = p["s1"], p["h1"]
    s2, h2 = p["s2"], p["h2"]
    sr, hr = p["sr"], p["hr"]

    eye_t = jnp.eye(T, dtype=jnp.float32)
    A_bd = jnp.stack([jnp.kron(eye_t, A[k]) for k in range(K)])           # (K, TV, TV)

    # gcn: fold BN1 scale into the 1x1 weight; BN1 shift + (conv bias passed
    # through the A contraction) become a single (C_out, TV) additive.
    Wg_fold = p["Wg"] * s1[None, :, None]                                 # (K, C_out, C_in)
    g_bias = jnp.einsum("kc,kw->cw", p["bg"], A.sum(axis=1))              # (C_out, V)
    add_g = s1[:, None] * jnp.tile(g_bias, (1, T)) + h1[:, None]          # (C_out, TV)

    # tcn: fold BN2 scale into the temporal weight (flattened to (C_out, KT*C_out),
    # column order = tap-major to match the stacked taps in the kernel).
    Wt_fold = (jnp.transpose(p["Wt"], (1, 0, 2)).reshape(C_out, KT * C_out)
               * s2[:, None])
    # residual: fold BN scale into the 1x1 weight.
    Wr_fold = sr[:, None] * p["Wr"]
    # all remaining additive constants collapse into one (C_out, TV) term.
    add_o = jnp.broadcast_to(
        ((s2 * p["bt"] + h2) + (sr * p["br"] + hr))[:, None], (C_out, TV))

    f32 = jnp.float32
    return (A_bd.astype(mxu_dtype), Wg_fold.astype(mxu_dtype), add_g.astype(f32),
            Wt_fold.astype(mxu_dtype), Wr_fold.astype(mxu_dtype), add_o.astype(f32))


def st_gcn_block_forward(x, A, p, *, nb=1, mxu_dtype=jnp.float32):
    """Returns (out, A) matching st_gcn_block.forward (eval-mode BN, stride=1)."""
    N, C_in, T, V = x.shape
    K, C_out, _ = p["Wg"].shape
    KT = p["Wt"].shape[0]
    TV = T * V
    assert N % nb == 0

    packed = _pack_params(A, p, T, mxu_dtype)
    # Lane-dense activations: last (lane) dim is T*V; reshape happens in the
    # wrapper so the kernel never crosses (8,128) tile boundaries.
    x2 = x.reshape(N, C_in, TV).astype(mxu_dtype)

    kern = functools.partial(st_gcn_block_kernel, T=T, V=V, mxu_dtype=mxu_dtype)

    def const_spec(shape):
        zeros = (0,) * len(shape)
        return pl.BlockSpec(shape, lambda n, _z=zeros: _z)   # constant index -> DMA'd once

    out = pl.pallas_call(
        kern,
        out_shape=jax.ShapeDtypeStruct((N, C_out, TV), x.dtype),
        grid=(N // nb,),
        in_specs=[
            pl.BlockSpec((nb, C_in, TV), lambda n: (n, 0, 0)),   # x, lane-dense
            const_spec((K, TV, TV)),                             # kron(I_T, A_k)
            const_spec((K, C_out, C_in)),                        # folded gcn weight
            const_spec((C_out, TV)),                             # folded gcn/BN1 additive
            const_spec((C_out, KT * C_out)),                     # folded temporal weight
            const_spec((C_out, C_in)),                           # folded residual weight
            const_spec((C_out, TV)),                             # folded output additive
        ],
        out_specs=pl.BlockSpec((nb, C_out, TV), lambda n: (n, 0, 0)),
        compiler_params=pltpu.CompilerParams(dimension_semantics=("parallel",)),
        # TODO(synk): for production ST-GCN shapes (e.g. C=256, T=300, V=25) add a
        # T-tiling grid axis with a (KT-1) halo and set vmem_limit_bytes so the
        # per-step working set fits v7x's 64 MiB VMEM.
    )(x2, *packed)
    return out.reshape(N, C_out, T, V), A


def ref_forward(x, A, p):
    """Pure-JAX reference mirroring the PyTorch ops (eval-mode BN)."""
    N, C_in, T, V = x.shape
    K, C_out, _ = p["Wg"].shape
    KT = p["Wt"].shape[0]
    pad = (KT - 1) // 2

    def bc(v):
        return v[None, :, None, None]

    Wg = p["Wg"].reshape(K * C_out, C_in)
    bg = p["bg"].reshape(K * C_out)
    y = jnp.einsum("oc,nctv->notv", Wg, x) + bc(bg)
    y = y.reshape(N, K, C_out, T, V)
    g = jnp.einsum("nkctv,kvw->nctw", y, A)

    z = jnp.maximum(g * bc(p["s1"]) + bc(p["h1"]), 0.0)
    zp = jnp.pad(z, ((0, 0), (0, 0), (pad, pad), (0, 0)))
    t = sum(jnp.einsum("oc,nctv->notv", p["Wt"][dt], zp[:, :, dt:dt + T, :])
            for dt in range(KT))
    t = (t + bc(p["bt"])) * bc(p["s2"]) + bc(p["h2"])

    r = jnp.einsum("oc,nctv->notv", p["Wr"], x) + bc(p["br"])
    r = r * bc(p["sr"]) + bc(p["hr"])
    return jnp.maximum(t + r, 0.0)


if __name__ == "__main__":
    # Small shapes: N=2, C_in=4, C_out=8, T=8, V=16 (T*V = 128 lanes), spatial K=3,
    # temporal kt=3, stride=1, dropout=0; in != out so residual is Conv1x1 + BN.
    N, C_in, C_out, T, V, K, KT = 2, 4, 8, 8, 16, 3, 3
    eps = 1e-5

    key = jax.random.PRNGKey(0)
    ks = jax.random.split(key, 24)

    x = jax.random.normal(ks[0], (N, C_in, T, V), jnp.float32)
    A = jax.random.uniform(ks[1], (K, V, V), jnp.float32)

    def bn_fold(kg, kb, km, kv, C):
        gamma = 1.0 + 0.1 * jax.random.normal(kg, (C,), jnp.float32)
        beta = 0.1 * jax.random.normal(kb, (C,), jnp.float32)
        mean = 0.1 * jax.random.normal(km, (C,), jnp.float32)
        var = 1.0 + 0.1 * jax.random.uniform(kv, (C,), jnp.float32)
        scale = gamma / jnp.sqrt(var + eps)
        shift = beta - mean * scale
        return scale, shift

    params = {
        "Wg": 0.2 * jax.random.normal(ks[2], (K, C_out, C_in), jnp.float32),
        "bg": 0.1 * jax.random.normal(ks[3], (K, C_out), jnp.float32),
        "Wt": 0.2 * jax.random.normal(ks[4], (KT, C_out, C_out), jnp.float32),
        "bt": 0.1 * jax.random.normal(ks[5], (C_out,), jnp.float32),
        "Wr": 0.2 * jax.random.normal(ks[6], (C_out, C_in), jnp.float32),
        "br": 0.1 * jax.random.normal(ks[7], (C_out,), jnp.float32),
    }
    params["s1"], params["h1"] = bn_fold(ks[8], ks[9], ks[10], ks[11], C_out)
    params["s2"], params["h2"] = bn_fold(ks[12], ks[13], ks[14], ks[15], C_out)
    params["sr"], params["hr"] = bn_fold(ks[16], ks[17], ks[18], ks[19], C_out)

    ref = ref_forward(x, A, params)

    # f32 MXU path, 1 batch element per grid step (2 parallel steps >= 2 TCs on v7x).
    out, A_out = st_gcn_block_forward(x, A, params, nb=1, mxu_dtype=jnp.float32)
    out = jax.block_until_ready(out)
    assert out.shape == (N, C_out, T, V), out.shape
    assert A_out.shape == (K, V, V)
    assert jnp.allclose(out, ref, rtol=1e-4, atol=1e-4), float(jnp.max(jnp.abs(out - ref)))

    # bf16 MXU-input path (v6e/v7x), 2 batch elements per grid step; f32 accumulation.
    out_bf, _ = st_gcn_block_forward(x, A, params, nb=2, mxu_dtype=jnp.bfloat16)
    out_bf = jax.block_until_ready(out_bf)
    assert jnp.allclose(out_bf, ref, rtol=1e-1, atol=1e-1), float(jnp.max(jnp.abs(out_bf - ref)))

    print("KERNEL_OK")
</pallas_src>

<mosaic_0001>
module attributes {stable_mosaic.version = 11 : i64} {
  func.func @st_gcn_block_kernel(%arg0: i32, %arg1: memref<1x4x128xf32, #tpu.memory_space<vmem>>, %arg2: memref<3x128x128xf32, #tpu.memory_space<vmem>>, %arg3: memref<3x8x4xf32, #tpu.memory_space<vmem>>, %arg4: memref<8x128xf32, #tpu.memory_space<vmem>>, %arg5: memref<8x24xf32, #tpu.memory_space<vmem>>, %arg6: memref<8x4xf32, #tpu.memory_space<vmem>>, %arg7: memref<8x128xf32, #tpu.memory_space<vmem>>, %arg8: memref<1x8x128xf32, #tpu.memory_space<vmem>>) attributes {dimension_semantics = [#tpu.dimension_semantics<parallel>], iteration_bounds = array<i64: 2>, scalar_prefetch = 0 : i64, scratch_operands = 0 : i64, tpu.core_type = #tpu.core_type<tc>, window_params = [{transform_indices = @transform_0, window_bounds = array<i64: 1, 4, 128>}, {pipeline_mode = #tpu.pipeline_mode<synchronous>, transform_indices = @transform_1, window_bounds = array<i64: 3, 128, 128>}, {pipeline_mode = #tpu.pipeline_mode<synchronous>, transform_indices = @transform_2, window_bounds = array<i64: 3, 8, 4>}, {pipeline_mode = #tpu.pipeline_mode<synchronous>, transform_indices = @transform_3, window_bounds = array<i64: 8, 128>}, {pipeline_mode = #tpu.pipeline_mode<synchronous>, transform_indices = @transform_4, window_bounds = array<i64: 8, 24>}, {pipeline_mode = #tpu.pipeline_mode<synchronous>, transform_indices = @transform_5, window_bounds = array<i64: 8, 4>}, {pipeline_mode = #tpu.pipeline_mode<synchronous>, transform_indices = @transform_6, window_bounds = array<i64: 8, 128>}, {transform_indices = @transform_7, window_bounds = array<i64: 1, 8, 128>}]} {
    %c0 = arith.constant 0 : index
    %c0_0 = arith.constant 0 : index
    %0 = vector.load %arg5[%c0, %c0_0] : memref<8x24xf32, #tpu.memory_space<vmem>>, vector<8x24xf32>
    %c0_1 = arith.constant 0 : index
    %c0_2 = arith.constant 0 : index
    %1 = vector.load %arg6[%c0_1, %c0_2] : memref<8x4xf32, #tpu.memory_space<vmem>>, vector<8x4xf32>
    %c0_3 = arith.constant 0 : index
    %c0_4 = arith.constant 0 : index
    %2 = vector.load %arg4[%c0_3, %c0_4] : memref<8x128xf32, #tpu.memory_space<vmem>>, vector<8x128xf32>
    %c0_5 = arith.constant 0 : index
    %c0_6 = arith.constant 0 : index
    %3 = vector.load %arg7[%c0_5, %c0_6] : memref<8x128xf32, #tpu.memory_space<vmem>>, vector<8x128xf32>
    %4 = tpu.iota {dimensions = array<i32: 1>} : vector<1x128xi32>
    %c0_7 = arith.constant 0 : index
    %c0_8 = arith.constant 0 : index
    %c0_9 = arith.constant 0 : index
    %5 = vector.load %arg1[%c0_7, %c0_8, %c0_9] : memref<1x4x128xf32, #tpu.memory_space<vmem>>, vector<1x4x128xf32>
    %6 = vector.shape_cast %5 : vector<1x4x128xf32> to vector<4x128xf32>
    %c0_10 = arith.constant 0 : index
    %c0_11 = arith.constant 0 : index
    %c0_12 = arith.constant 0 : index
    %7 = vector.load %arg2[%c0_10, %c0_11, %c0_12] : memref<3x128x128xf32, #tpu.memory_space<vmem>>, vector<1x128x128xf32>
    %8 = vector.shape_cast %7 : vector<1x128x128xf32> to vector<128x128xf32>
    %cst = arith.constant dense<0.000000e+00> : vector<4x128xf32>
    %9 = tpu.matmul %6, %8, %cst {dimension_numbers = #tpu.dot_dimension_numbers<[1], [0], [0], [1], [0, 0, 1, 1], [], []>} : vector<4x128xf32>, vector<128x128xf32>, vector<4x128xf32> -> vector<4x128xf32>
    %c0_13 = arith.constant 0 : index
    %c0_14 = arith.constant 0 : index
    %c0_15 = arith.constant 0 : index
    %10 = vector.load %arg3[%c0_13, %c0_14, %c0_15] : memref<3x8x4xf32, #tpu.memory_space<vmem>>, vector<1x8x4xf32>
    %11 = vector.shape_cast %10 : vector<1x8x4xf32> to vector<8x4xf32>
    %cst_16 = arith.constant dense<0.000000e+00> : vector<8x128xf32>
    %12 = tpu.matmul %11, %9, %cst_16 {dimension_numbers = #tpu.dot_dimension_numbers<[1], [0], [0], [1], [0, 0, 1, 1], [], []>} : vector<8x4xf32>, vector<4x128xf32>, vector<8x128xf32> -> vector<8x128xf32>
    %13 = arith.addf %2, %12 : vector<8x128xf32>
    %c1 = arith.constant 1 : index
    %c0_17 = arith.constant 0 : index
    %c0_18 = arith.constant 0 : index
    %14 = vector.load %arg2[%c1, %c0_17, %c0_18] : memref<3x128x128xf32, #tpu.memory_space<vmem>>, vector<1x128x128xf32>
    %15 = vector.shape_cast %14 : vector<1x128x128xf32> to vector<128x128xf32>
    %cst_19 = arith.constant dense<0.000000e+00> : vector<4x128xf32>
    %16 = tpu.matmul %6, %15, %cst_19 {dimension_numbers = #tpu.dot_dimension_numbers<[1], [0], [0], [1], [0, 0, 1, 1], [], []>} : vector<4x128xf32>, vector<128x128xf32>, vector<4x128xf32> -> vector<4x128xf32>
    %c1_20 = arith.constant 1 : index
    %c0_21 = arith.constant 0 : index
    %c0_22 = arith.constant 0 : index
    %17 = vector.load %arg3[%c1_20, %c0_21, %c0_22] : memref<3x8x4xf32, #tpu.memory_space<vmem>>, vector<1x8x4xf32>
    %18 = vector.shape_cast %17 : vector<1x8x4xf32> to vector<8x4xf32>
    %cst_23 = arith.constant dense<0.000000e+00> : vector<8x128xf32>
    %19 = tpu.matmul %18, %16, %cst_23 {dimension_numbers = #tpu.dot_dimension_numbers<[1], [0], [0], [1], [0, 0, 1, 1], [], []>} : vector<8x4xf32>, vector<4x128xf32>, vector<8x128xf32> -> vector<8x128xf32>
    %20 = arith.addf %13, %19 : vector<8x128xf32>
    %c2 = arith.constant 2 : index
    %c0_24 = arith.constant 0 : index
    %c0_25 = arith.constant 0 : index
    %21 = vector.load %arg2[%c2, %c0_24, %c0_25] : memref<3x128x128xf32, #tpu.memory_space<vmem>>, vector<1x128x128xf32>
    %22 = vector.shape_cast %21 : vector<1x128x128xf32> to vector<128x128xf32>
    %cst_26 = arith.constant dense<0.000000e+00> : vector<4x128xf32>
    %23 = tpu.matmul %6, %22, %cst_26 {dimension_numbers = #tpu.dot_dimension_numbers<[1], [0], [0], [1], [0, 0, 1, 1], [], []>} : vector<4x128xf32>, vector<128x128xf32>, vector<4x128xf32> -> vector<4x128xf32>
    %c2_27 = arith.constant 2 : index
    %c0_28 = arith.constant 0 : index
    %c0_29 = arith.constant 0 : index
    %24 = vector.load %arg3[%c2_27, %c0_28, %c0_29] : memref<3x8x4xf32, #tpu.memory_space<vmem>>, vector<1x8x4xf32>
    %25 = vector.shape_cast %24 : vector<1x8x4xf32> to vector<8x4xf32>
    %cst_30 = arith.constant dense<0.000000e+00> : vector<8x128xf32>
    %26 = tpu.matmul %25, %23, %cst_30 {dimension_numbers = #tpu.dot_dimension_numbers<[1], [0], [0], [1], [0, 0, 1, 1], [], []>} : vector<8x4xf32>, vector<4x128xf32>, vector<8x128xf32> -> vector<8x128xf32>
    %27 = arith.addf %20, %26 : vector<8x128xf32>
    %cst_31 = arith.constant 0.000000e+00 : f32
    %28 = vector.broadcast %cst_31 : f32 to vector<8x128xf32>
    %29 = arith.maximumf %27, %28 : vector<8x128xf32>
    %c16_i32 = arith.constant 16 : i32
    %30 = tpu.dynamic_rotate %29 by %c16_i32 dim 1 : vector<8x128xf32>, i32 -> vector<8x128xf32>
    %c16_i32_32 = arith.constant 16 : i32
    %31 = vector.broadcast %c16_i32_32 : i32 to vector<1x128xi32>
    %32 = arith.cmpi sge, %4, %31 : vector<1x128xi32>
    %cst_33 = arith.constant 0.000000e+00 : f32
    %33 = vector.shape_cast %32 : vector<1x128xi1> to vector<1x128xi1>
    %34 = vector.broadcast %33 : vector<1x128xi1> to vector<8x128xi1>
    %35 = vector.broadcast %cst_33 : f32 to vector<8x128xf32>
    %36 = arith.select %34, %30, %35 : vector<8x128xi1>, vector<8x128xf32>
    %c112_i32 = arith.constant 112 : i32
    %37 = tpu.dynamic_rotate %29 by %c112_i32 dim 1 : vector<8x128xf32>, i32 -> vector<8x128xf32>
    %c112_i32_34 = arith.constant 112 : i32
    %38 = vector.broadcast %c112_i32_34 : i32 to vector<1x128xi32>
    %39 = arith.cmpi slt, %4, %38 : vector<1x128xi32>
    %cst_35 = arith.constant 0.000000e+00 : f32
    %40 = vector.shape_cast %39 : vector<1x128xi1> to vector<1x128xi1>
    %41 = vector.broadcast %40 : vector<1x128xi1> to vector<8x128xi1>
    %42 = vector.broadcast %cst_35 : f32 to vector<8x128xf32>
    %43 = arith.select %41, %37, %42 : vector<8x128xi1>, vector<8x128xf32>
    %44 = tpu.concatenate %36, %29, %43 in 0 : vector<8x128xf32>, vector<8x128xf32>, vector<8x128xf32> -> vector<24x128xf32>
    %cst_36 = arith.constant dense<0.000000e+00> : vector<8x128xf32>
    %45 = tpu.matmul %0, %44, %cst_36 {dimension_numbers = #tpu.dot_dimension_numbers<[1], [0], [0], [1], [0, 0, 1, 1], [], []>} : vector<8x24xf32>, vector<24x128xf32>, vector<8x128xf32> -> vector<8x128xf32>
    %cst_37 = arith.constant dense<0.000000e+00> : vector<8x128xf32>
    %46 = tpu.matmul %1, %6, %cst_37 {dimension_numbers = #tpu.dot_dimension_numbers<[1], [0], [0], [1], [0, 0, 1, 1], [], []>} : vector<8x4xf32>, vector<4x128xf32>, vector<8x128xf32> -> vector<8x128xf32>
    %47 = arith.addf %45, %46 : vector<8x128xf32>
    %48 = arith.addf %47, %3 : vector<8x128xf32>
    %cst_38 = arith.constant 0.000000e+00 : f32
    %49 = vector.broadcast %cst_38 : f32 to vector<8x128xf32>
    %50 = arith.maximumf %48, %49 : vector<8x128xf32>
    %c0_39 = arith.constant 0 : index
    %c0_40 = arith.constant 0 : index
    %c0_41 = arith.constant 0 : index
    %51 = vector.load %arg8[%c0_39, %c0_40, %c0_41] : memref<1x8x128xf32, #tpu.memory_space<vmem>>, vector<1x8x128xf32>
    %52 = vector.shape_cast %51 : vector<1x8x128xf32> to vector<8x128xf32>
    %53 = vector.shape_cast %50 : vector<8x128xf32> to vector<1x8x128xf32>
    tpu.vector_store %arg8[%c0_39, %c0_40, %c0_41], %53 {strides = array<i32>} : memref<1x8x128xf32, #tpu.memory_space<vmem>>, vector<1x8x128xf32>,
    return
  }
  func.func @transform_0(%arg0: i32) -> (i32, i32, i32) {
    %c0_i32 = arith.constant 0 : i32
    %c0_i32_0 = arith.constant 0 : i32
    %c0_i32_1 = arith.constant 0 : i32
    return %arg0, %c0_i32, %c0_i32_0 : i32, i32, i32
  }
  func.func @transform_1(%arg0: i32) -> (i32, i32, i32) {
    %c0_i32 = arith.constant 0 : i32
    %c0_i32_0 = arith.constant 0 : i32
    %c0_i32_1 = arith.constant 0 : i32
    %c0_i32_2 = arith.constant 0 : i32
    return %c0_i32, %c0_i32_0, %c0_i32_1 : i32, i32, i32
  }
  func.func @transform_2(%arg0: i32) -> (i32, i32, i32) {
    %c0_i32 = arith.constant 0 : i32
    %c0_i32_0 = arith.constant 0 : i32
    %c0_i32_1 = arith.constant 0 : i32
    %c0_i32_2 = arith.constant 0 : i32
    return %c0_i32, %c0_i32_0, %c0_i32_1 : i32, i32, i32
  }
  func.func @transform_3(%arg0: i32) -> (i32, i32) {
    %c0_i32 = arith.constant 0 : i32
    %c0_i32_0 = arith.constant 0 : i32
    %c0_i32_1 = arith.constant 0 : i32
    return %c0_i32, %c0_i32_0 : i32, i32
  }
  func.func @transform_4(%arg0: i32) -> (i32, i32) {
    %c0_i32 = arith.constant 0 : i32
    %c0_i32_0 = arith.constant 0 : i32
    %c0_i32_1 = arith.constant 0 : i32
    return %c0_i32, %c0_i32_0 : i32, i32
  }
  func.func @transform_5(%arg0: i32) -> (i32, i32) {
    %c0_i32 = arith.constant 0 : i32
    %c0_i32_0 = arith.constant 0 : i32
    %c0_i32_1 = arith.constant 0 : i32
    return %c0_i32, %c0_i32_0 : i32, i32
  }
  func.func @transform_6(%arg0: i32) -> (i32, i32) {
    %c0_i32 = arith.constant 0 : i32
    %c0_i32_0 = arith.constant 0 : i32
    %c0_i32_1 = arith.constant 0 : i32
    return %c0_i32, %c0_i32_0 : i32, i32
  }
  func.func @transform_7(%arg0: i32) -> (i32, i32, i32) {
    %c0_i32 = arith.constant 0 : i32
    %c0_i32_0 = arith.constant 0 : i32
    %c0_i32_1 = arith.constant 0 : i32
    return %arg0, %c0_i32, %c0_i32_0 : i32, i32, i32
  }
}

</mosaic_0001>

<bundles_post_ra>
// kernel: tpu_custom_call.1
= control target key start
LH: loop header
LB: loop body
LE: loop exit
PB: predicated region body
PF: predicated region fallthrough
CT: control target
= control target key end

     0   :  { %12 = vsyncpa [#allocation3], 0  ;;  %s1674_s0 = inlined_call_operand.vmem [shape: f32[2,4,128], index: 0, kind: input, shape index: {}]   ;;  %s1675_s1 = inlined_call_operand.hbm [shape: f32[3,128,128], index: 1, kind: input, shape index: {}]   ;;  %s1676_s2 = inlined_call_operand.vmem [shape: f32[3,8,4], index: 2, kind: input, shape index: {}]   ;;  %s1677_s3 = inlined_call_operand.vmem [shape: f32[8,128], index: 3, kind: input, shape index: {}]   ;;  %s1678_s4 = inlined_call_operand.vmem [shape: f32[8,24], index: 4, kind: input, shape index: {}]   ;;  %s1679_s5 = inlined_call_operand.vmem [shape: f32[8,4], index: 5, kind: input, shape index: {}]   ;;  %s1680_s6 = inlined_call_operand.vmem [shape: f32[8,128], index: 6, kind: input, shape index: {}]   ;;  %s1681_s7 = inlined_call_operand.hbm [shape: f32[2,8,128], index: 7, kind: output, shape index: {}]  }
   0x1   :  { %13 = vsyncpa [#allocation4], 0 }
   0x2   :  { %15 = vsyncpa [#allocation4 + $0x1], 0  ;;  %s1463_s24 = smov 0   ;;  %s1465_s25 = smov 0  }
   0x3   :  { %s1467_s26 = smov 0   ;;  %s1469_s27 = smov 0  }
   0x4 LB: > { %s1484_s28 = sadd.s32 4294967295, %s1413_s27   ;;  %s1045_s29 = sadd.s32 4294967294, %s1413_s27   ;;  %s1413_s27 = sphi %s1469_s27, %s1689_s27   ;;  %s1409_s26 = sphi %s1467_s26, %s1688_s26   ;;  %s1405_s25 = sphi %s1465_s25, %s1687_s25   ;;  %s1401_s24 = sphi %s1463_s24, %s1686_s24  }
   0x5   : > { %s1488_s30 = sadd.s32 1, %s1413_s27   ;;  %s180_s8 = sadd.s32 1, %s1409_s26 }
   0x6   : > { %s177_s9 = ssub.s32 %s1413_s27, %s1488_s30  ;;  %p190_p0 = scmp.ne.s32.totalorder %s1409_s26, %s1405_s25 }
   0x7   : > { %p178_p1 = scmp.eq.s32.totalorder %s177_s9, 0  ;;  %p191_p2 = scmp.eq.s32.totalorder %s1484_s28, 1 }
   0x8   : > { %p196_p3 = scmp.ne.s32.totalorder %s1405_s25, %s1401_s24  ;;  %p197_p4 = scmp.eq.s32.totalorder %s1045_s29, 1 }
   0x9   : > { %s1499_s10 = scalar_select %p178_p1, %s1409_s26, %s180_s8  }
   0xa   : > { %p1501_p5 = por %p191_p2, %p190_p0  ;;  %p1505_p6 = por %p197_p4, %p196_p3 }
   0xb   : > { %p1046_p7 = scmp.ge.s32.totalorder %s1413_s27, 1  ;;  %p204_p8 = scmp.lt.s32.totalorder %s1413_s27, 3 }
   0xc   : > { %s1683_s12 = scalar_select %p1505_p6, 1, 0 }
   0xd   : > { %p1281_p9 = scmp.eq.s32.totalorder %s1484_s28, 0  ;;  %p1512_p10 = pnand %p1046_p7, %p204_p8 }
   0xe   : > { %s1415_s14 = smov [#allocation2]  }
   0xf   : > { %s216_s15 = sshll.u32 %s1415_s14, 4  ;;  %p1273_p11 = pneg %p1512_p10  ;;  %s217_s15 = int_to_ptr.vmem [resolvable:$true] %s216_s15 }
  0x10   : > { %s1334_s16 = scalar_lea.vmem %s217_s15, 6144  ;;  %p1342_p3 = scmp.lt.s32.totalorder %s217_s15, %s217_s15 }
  0x11   : > { %p1274_p12 = pnand %p1281_p9, %p1273_p11  ;;  %p1335_p0 = scmp.ne.s32.totalorder %s217_s15, %s1334_s16 }
  0x12   : > { %p1343_p4 = scmp.lt.s32.totalorder %s1334_s16, %s1334_s16 }
  0x13   : > { %p1325_p13 = pneg %p1274_p12 }
  0x14   : > { %p1344_p6 = por %p1343_p4, %p1342_p3 }
  0x15   : > { %p1337_p1 = pnand %p1335_p0, %p1325_p13 }
  0x17   : > { %p1338_p2 = pneg %p1337_p1 }
  0x19   : > { %p1345_p7 = pnand %p1344_p6, %p1338_p2 }
  0x1b   : > { %1348 = shalt.err (!%p1345_p7)
}
  0x1c   : > { %s1416_s17 = smov 128   ;;  %s1417_s18 = smov 8  }
  0x1d   : > { %1276 = dma.hbm_to_vmem [thread:$0]  (!%p1274_p12), %s1675_s1, 6144, %s217_s15, [#allocation3], %s1416_s17, %s1416_s17, %s1417_s18  }
  0x1e   : > { %254 = sbr.rel (%p1512_p10) target bundleno = 826 (0x33a), region = 48 }
  0x23   : > { %1392 = dma.done.wait (%p1281_p9), [#allocation3], 6144  }
  0x24   : > { %1394 = vsyncadd (%p1281_p9), [#allocation3], 4294961152  ;;  %v1418_v0 = vmov 0.0   ;;  %vm1419_vm0 = vmmov 0   ;;  %v311_v1 = vld [vmem:[#allocation2 + $0x78] sm:$0xff]  ;;  %v310_v3 = vld [vmem:[#allocation2 + $0x70] sm:$0xff] }
  0x25   : > { %1133 = vmatprep.subr.mxu0 %v1418_v0  ;;  %1173 = vmatprep.subr.mxu1 %v1418_v0  ;;  %v478_v2 = vld [vmem:[#allocation2 + $0xf8] sm:$0xff]  ;;  %v477_v4 = vld [vmem:[#allocation2 + $0xf0] sm:$0xff]  ;;  %v309_v5 = vld [vmem:[#allocation2 + $0x68] sm:$0xff]  ;;  %p285_p6 = scmp.lt.s32.totalorder %s1484_s28, 1  ;;  %vm387_vm1 = vcmask 1043456   ;;  %vm383_vm2 = vcmask 31744  }
  0x26   : > { %1165 = vmatprep.mubr.msk.f32.mxu0 %vm1419_vm0, %v1418_v0  ;;  %1205 = vmatprep.mubr.msk.f32.mxu1 %vm1419_vm0, %v1418_v0  ;;  %v476_v6 = vld [vmem:[#allocation2 + $0xe8] sm:$0xff]  ;;  %v308_v7 = vld [vmem:[#allocation2 + $0x60] sm:$0xff]  ;;  %v307_v9 = vld [vmem:[#allocation2 + $0x58] sm:$0xff]  ;;  %s1421_s23 = smov 16   ;;  %vm883_vm5 = vcmask 195584   ;;  %s282_s9 = sand.u32 1, %s1405_s25  }
  0x27   : > { %1134 = vmatpush3.msra.mxu0 %v311_v1  ;;  %1174 = vmatpush3.msra.mxu1 %v478_v2  ;;  %v475_v8 = vld [vmem:[#allocation2 + $0xe0] sm:$0xff]  ;;  %v474_v10 = vld [vmem:[#allocation2 + $0xd8] sm:$0xff]  ;;  %v306_v11 = vld [vmem:[#allocation2 + $0x50] sm:$0xff]  ;;  %s286_s21 = scalar_select %p285_p6, %s1484_s28, 1 }
  0x28   : > { %1135 = vmatprep.subr.mxu0 %v1418_v0  ;;  %1175 = vmatprep.subr.mxu1 %v1418_v0  ;;  %v473_v12 = vld [vmem:[#allocation2 + $0xd0] sm:$0xff]  ;;  %v305_v13 = vld [vmem:[#allocation2 + $0x48] sm:$0xff]  ;;  %v304_v15 = vld [vmem:[#allocation2 + $0x40] sm:$0xff]  ;;  %s1051_s13 = sshll.u32 %s282_s9, 3  ;;  %s1067_s16 = sshll.u32 %s1484_s28, 7 }
  0x29   : > { %1136 = vmatpush3.msra.mxu0 %v310_v3  ;;  %1176 = vmatpush3.msra.mxu1 %v477_v4  ;;  %v472_v14 = vld [vmem:[#allocation2 + $0xc8] sm:$0xff]  ;;  %v471_v16 = vld [vmem:[#allocation2 + $0xc0] sm:$0xff]  ;;  %v303_v17 = vld [vmem:[#allocation2 + $0x38] sm:$0xff]  ;;  %s1052_s22 = sshll.u32 %s286_s21, 2  ;;  %s284_s17 = scalar_lea.vmem [#allocation5], %s1051_s13 }
  0x2a   : > { %1137 = vmatprep.subr.mxu0 %v1418_v0  ;;  %1177 = vmatprep.subr.mxu1 %v1418_v0  ;;  %v470_v18 = vld [vmem:[#allocation2 + $0xb8] sm:$0xff]  ;;  %v302_v19 = vld [vmem:[#allocation2 + $0x30] sm:$0xff]  ;;  %v301_v21 = vld [vmem:[#allocation2 + $0x28] sm:$0xff]  ;;  %s288_s8 = scalar_lea.vmem %s1674_s0, %s1052_s22  ;;  %s1420_s22 = smov 112  }
  0x2b   : > { %1138 = vmatpush3.msra.mxu0 %v309_v5  ;;  %1178 = vmatpush3.msra.mxu1 %v476_v6  ;;  %v469_v20 = vld [vmem:[#allocation2 + $0xb0] sm:$0xff]  ;;  %v468_v22 = vld [vmem:[#allocation2 + $0xa8] sm:$0xff]  ;;  %v300_v23 = vld [vmem:[#allocation2 + $0x20] sm:$0xff]  ;;  %s974_s18 = sshll.u32 %s284_s17, 4  ;;  %s972_s21 = scalar_lea.hbm %s1681_s7, %s1067_s16  ;;  %s975_s18 = int_to_ptr.vmem [resolvable:$true] %s974_s18 }
  0x2c   : > { %1139 = vmatprep.subr.mxu0 %v1418_v0  ;;  %1179 = vmatprep.subr.mxu1 %v1418_v0  ;;  %v467_v24 = vld [vmem:[#allocation2 + $0xa0] sm:$0xff]  ;;  %v299_v25 = vld [vmem:[#allocation2 + $0x18] sm:$0xff]  ;;  %v298_v27 = vld [vmem:[#allocation2 + $0x10] sm:$0xff]  ;;  %s1422_s29 = smov [#allocation5]  }
  0x2d   : > { %1140 = vmatpush3.msra.mxu0 %v308_v7  ;;  %1180 = vmatpush3.msra.mxu1 %v475_v8  ;;  %v466_v26 = vld [vmem:[#allocation2 + $0x98] sm:$0xff]  ;;  %v465_v28 = vld [vmem:[#allocation2 + $0x90] sm:$0xff]  ;;  %v297_v29 = vld [vmem:[#allocation2 + $0x8] sm:$0xff]  ;;  %v293_v8 = vlaneseq }
  0x2e   : > { %1141 = vmatprep.subr.mxu0 %v1418_v0  ;;  %1181 = vmatprep.subr.mxu1 %v1418_v0  ;;  %v464_v30 = vld [vmem:[#allocation2 + $0x88] sm:$0xff]  ;;  %v296_v31 = vld [vmem:[#allocation2] sm:$0xff]  ;;  %v644_v34 = vld [vmem:[#allocation2 + $0x178] sm:$0xff] }
  0x2f   : > { %1142 = vmatpush3.msra.mxu0 %v307_v9  ;;  %1182 = vmatpush3.msra.mxu1 %v474_v10  ;;  %v463_v32 = vld [vmem:[#allocation2 + $0x80] sm:$0xff]  ;;  %v643_v35 = vld [vmem:[#allocation2 + $0x170] sm:$0xff]  ;;  %v642_v36 = vld [vmem:[#allocation2 + $0x168] sm:$0xff]  ;;  %v294_v9 = vand.u32 127, %v293_v8 }
  0x30   : > { %1143 = vmatprep.subr.mxu0 %v1418_v0  ;;  %1183 = vmatprep.subr.mxu1 %v1418_v0  ;;  %v1568_v33 = vld [vmem:[%s288_s8] sm:$0xf]  ;;  %v640_v38 = vld [vmem:[#allocation2 + $0x158] sm:$0xff]  ;;  %v639_v39 = vld [vmem:[#allocation2 + $0x150] sm:$0xff]  ;;  %s1353_s8 = sshll.u32 %s1422_s29, 4  ;;  %s1354_s8 = int_to_ptr.vmem [resolvable:$false] %s1353_s8 }
  0x31   : > { %1144 = vmatpush3.msra.mxu0 %v306_v11  ;;  %1184 = vmatpush3.msra.mxu1 %v473_v12  ;;  %v641_v37 = vld [vmem:[#allocation2 + $0x160] sm:$0xff]  ;;  %v638_v40 = vld [vmem:[#allocation2 + $0x148] sm:$0xff]  ;;  %v636_v42 = vld [vmem:[#allocation2 + $0x138] sm:$0xff]  ;;  %vm803_vm3 = vcmp.lt.s32.totalorder %v294_v9, 112  ;;  %vm797_vm4 = vcmp.ge.s32.totalorder %v294_v9, 16  ;;  %s1355_s28 = scalar_lea.vmem %s1354_s8, 256  ;;  %p1356_p11 = scmp.lt.s32.totalorder %s975_s18, %s1354_s8 }
  0x32   : > { %1145 = vmatprep.subr.mxu0 %v1418_v0  ;;  %1185 = vmatprep.subr.mxu1 %v1418_v0  ;;  %v637_v41 = vld [vmem:[#allocation2 + $0x140] sm:$0xff]  ;;  %v635_v43 = vld [vmem:[#allocation2 + $0x130] sm:$0xff]  ;;  %v634_v44 = vld [vmem:[#allocation2 + $0x128] sm:$0xff] }
  0x33   : > { %1146 = vmatpush3.msra.mxu0 %v305_v13  ;;  %1186 = vmatpush3.msra.mxu1 %v472_v14  ;;  %v633_v45 = vld [vmem:[#allocation2 + $0x120] sm:$0xff]  ;;  %v632_v46 = vld [vmem:[#allocation2 + $0x118] sm:$0xff]  ;;  %v631_v47 = vld [vmem:[#allocation2 + $0x110] sm:$0xff] }
  0x34   : > { %1147 = vmatprep.subr.mxu0 %v1418_v0  ;;  %1187 = vmatprep.subr.mxu1 %v1418_v0  ;;  %v630_v48 = vld [vmem:[#allocation2 + $0x108] sm:$0xff]  ;;  %v629_v49 = vld [vmem:[#allocation2 + $0x100] sm:$0xff]  ;;  %v1058_v56 = vld [vmem:[%s1676_s2 + $0x10] sm:$0xff] }
  0x35   : > { %1148 = vmatpush3.msra.mxu0 %v304_v15  ;;  %1188 = vmatpush3.msra.mxu1 %v471_v16  ;;  %v382_v50 = vld [vmem:[%s1676_s2] sm:$0xff]  ;;  %v1055_v55 = vld [vmem:[%s1676_s2 + $0x8] sm:$0xff] }
  0x36   : > { %1149 = vmatprep.subr.mxu0 %v1418_v0  ;;  %1189 = vmatprep.subr.mxu1 %v1418_v0  ;;  %v290_v63 = vld [vmem:[%s1679_s5] sm:$0xff] }
  0x37   : > { %1150 = vmatpush3.msra.mxu0 %v303_v17  ;;  %1190 = vmatpush3.msra.mxu1 %v470_v18  ;;  %v291_v1 = vld [vmem:[%s1677_s3] sm:$0xff] }
  0x38   : > { %1151 = vmatprep.subr.mxu0 %v1418_v0  ;;  %1191 = vmatprep.subr.mxu1 %v1418_v0  ;;  %v289_v11 = vld [vmem:[%s1678_s4] sm:$0xff] }
  0x39   : > { %1152 = vmatpush3.msra.mxu0 %v302_v19  ;;  %1192 = vmatpush3.msra.mxu1 %v469_v20  ;;  %v292_v15 = vld [vmem:[%s1680_s6] sm:$0xff] }
  0x3a   : > { %1153 = vmatprep.subr.mxu0 %v1418_v0  ;;  %1193 = vmatprep.subr.mxu1 %v1418_v0 }
  0x3b   : > { %1154 = vmatpush3.msra.mxu0 %v301_v21  ;;  %1194 = vmatpush3.msra.mxu1 %v468_v22 }
  0x3c   : > { %1155 = vmatprep.subr.mxu0 %v1418_v0  ;;  %1195 = vmatprep.subr.mxu1 %v1418_v0 }
  0x3d   : > { %1156 = vmatpush3.msra.mxu0 %v300_v23  ;;  %1196 = vmatpush3.msra.mxu1 %v467_v24 }
  0x3e   : > { %1157 = vmatprep.subr.mxu0 %v1418_v0  ;;  %1197 = vmatprep.subr.mxu1 %v1418_v0 }
  0x3f   : > { %1158 = vmatpush3.msra.mxu0 %v299_v25  ;;  %1198 = vmatpush3.msra.mxu1 %v466_v26 }
  0x40   : > { %1159 = vmatprep.subr.mxu0 %v1418_v0  ;;  %1199 = vmatprep.subr.mxu1 %v1418_v0 }
  0x41   : > { %1160 = vmatpush3.msra.mxu0 %v298_v27  ;;  %1200 = vmatpush3.msra.mxu1 %v465_v28 }
  0x42   : > { %1161 = vmatprep.subr.mxu0 %v1418_v0  ;;  %1201 = vmatprep.subr.mxu1 %v1418_v0 }
  0x43   : > { %1162 = vmatpush3.msra.mxu0 %v297_v29  ;;  %1202 = vmatpush3.msra.mxu1 %v464_v30 }
  0x44   : > { %1163 = vmatprep.subr.mxu0 %v1418_v0  ;;  %1203 = vmatprep.subr.mxu1 %v1418_v0 }
  0x45   : > { %1164 = vmatpush3.msra.mxu0 %v296_v31  ;;  %1204 = vmatpush3.msra.mxu1 %v463_v32 }
  0x46   : > { %1166 = vmatmul.mubr.f32.vlgmr.msra.gmra.mxu0 %v1568_v33  ;;  %1206 = vmatmul.mubr.f32.vlgmr.msra.gmra.mxu1 %v1568_v33 }
  0x47   : > { %1213 = vmatprep.subr.mxu1 %v1418_v0  ;;  %1245 = vmatprep.mubr.msk.f32.mxu1 %vm1419_vm0, %v1418_v0 }
  0x48   : > { %1214 = vmatpush3.msra.mxu1 %v644_v34  ;;  %1168 = vmatprep.subr.mxu0 %v1418_v0 }
  0x49   : > { %1215 = vmatprep.subr.mxu1 %v1418_v0  ;;  %1170 = vmatprep.mubr.msk.f32.mxu0 %vm1419_vm0, %v1418_v0 }
  0x4a   : > { %1216 = vmatpush3.msra.mxu1 %v643_v35 }
  0x4b   : > { %1217 = vmatprep.subr.mxu1 %v1418_v0 }
  0x4c   : > { %1218 = vmatpush3.msra.mxu1 %v642_v36 }
  0x4d   : > { %1219 = vmatprep.subr.mxu1 %v1418_v0 }
  0x4e   : > { %1220 = vmatpush3.msra.mxu1 %v641_v37 }
  0x4f   : > { %1221 = vmatprep.subr.mxu1 %v1418_v0 }
  0x50   : > { %1222 = vmatpush3.msra.mxu1 %v640_v38 }
  0x51   : > { %1223 = vmatprep.subr.mxu1 %v1418_v0 }
  0x52   : > { %1224 = vmatpush3.msra.mxu1 %v639_v39 }
  0x53   : > { %1225 = vmatprep.subr.mxu1 %v1418_v0 }
  0x54   : > { %1226 = vmatpush3.msra.mxu1 %v638_v40 }
  0x55   : > { %1227 = vmatprep.subr.mxu1 %v1418_v0 }
  0x56   : > { %1228 = vmatpush3.msra.mxu1 %v637_v41 }
  0x57   : > { %1229 = vmatprep.subr.mxu1 %v1418_v0 }
  0x58   : > { %1230 = vmatpush3.msra.mxu1 %v636_v42 }
  0x59   : > { %1231 = vmatprep.subr.mxu1 %v1418_v0 }
  0x5a   : > { %1232 = vmatpush3.msra.mxu1 %v635_v43 }
  0x5b   : > { %1233 = vmatprep.subr.mxu1 %v1418_v0 }
  0x5c   : > { %1234 = vmatpush3.msra.mxu1 %v634_v44 }
  0x5d   : > { %1235 = vmatprep.subr.mxu1 %v1418_v0 }
  0x5e   : > { %1236 = vmatpush3.msra.mxu1 %v633_v45 }
  0x5f   : > { %1237 = vmatprep.subr.mxu1 %v1418_v0 }
  0x60   : > { %1238 = vmatpush3.msra.mxu1 %v632_v46 }
  0x61   : > { %1239 = vmatprep.subr.mxu1 %v1418_v0 }
  0x62   : > { %1240 = vmatpush3.msra.mxu1 %v631_v47 }
  0x63   : > { %1241 = vmatprep.subr.mxu1 %v1418_v0 }
  0x64   : > { %1242 = vmatpush3.msra.mxu1 %v630_v48 }
  0x65   : > { %1243 = vmatprep.subr.mxu1 %v1418_v0 }
  0x66   : > { %1244 = vmatpush3.msra.mxu1 %v629_v49 }
  0x67   : > { %1246 = vmatmul.mubr.f32.vlgmr.msra.gmra.mxu1 %v1568_v33 }
 0x106   : > { %v378_v51 = vpop.f32.mrf.mxu0  ;;  %v545_v52 = vpop.f32.mrf.mxu1 }
 0x107   : > { %1169 = vmatpush3.msk.msra.mxu0 %vm387_vm1, %v378_v51 }
 0x108   : > { %v1207_v53 = vpop.f32.mrf.mxu1  ;;  %1208 = vmatprep.subr.mxu0 %v1418_v0  ;;  %1171 = vmatmul.mubr.msk.f32.vlgmr.msra.gmra.mxu0 %vm383_vm2, %v382_v50  ;;  %v1167_v54 = vpop.f32.mrf.mxu0 }
 0x109   : > { %1209 = vmatpush3.msk.msra.mxu0 %vm387_vm1, %v545_v52  ;;  %1210 = vmatprep.mubr.msk.f32.mxu0 %vm1419_vm0, %v1418_v0 }
 0x10a   : > { %1248 = vmatprep.subr.mxu0 %v1418_v0 }
 0x10c   : > { %1211 = vmatmul.mubr.msk.f32.vlgmr.msra.gmra.mxu0 %vm383_vm2, %v1055_v55 }
 0x10d   : > { %1250 = vmatprep.mubr.msk.f32.mxu0 %vm1419_vm0, %v1418_v0 }
 0x127   : > { %v711_v57 = vpop.f32.mrf.mxu1 }
 0x128   : > { %1249 = vmatpush3.msk.msra.mxu0 %vm387_vm1, %v711_v57 }
 0x129   : > { %v1247_v58 = vpop.f32.mrf.mxu1  ;;  %1251 = vmatmul.mubr.msk.f32.vlgmr.msra.gmra.mxu0 %vm383_vm2, %v1058_v56  ;;  %1253 = vmatprep.subr.mxu0 %v1418_v0 }
 0x12a   : > { %1254 = vmatpush3.msk.msra.mxu0 %vm387_vm1, %v1568_v33  ;;  %1255 = vmatprep.mubr.msk.f32.mxu0 %vm1419_vm0, %v1418_v0 }
 0x12b   : > { %1258 = vmatprep.subr.mxu0 %v1418_v0 }
 0x12d   : > { %1256 = vmatmul.mubr.msk.f32.vlgmr.msra.gmra.mxu0 %vm383_vm2, %v290_v63 }
 0x12e   : > { %1264 = vmatprep.mubr.msk.f32.mxu0 %vm1419_vm0, %v1418_v0 }
 0x1c8   : > { %v457_v59 = vpop.f32.mrf.mxu0 }
 0x1c9   : > { %v461_v2 = vadd.f32 %v457_v59, %v291_v1 }
 0x1ca   : > { %v1172_v60 = vpop.f32.mrf.mxu0 }
 0x1cc   : > { %v623_v61 = vpop.f32.mrf.mxu0 }
 0x1cd   : > { %v627_v3 = vadd.f32 %v623_v61, %v461_v2 }
 0x1ce   : > { %v1212_v62 = vpop.f32.mrf.mxu0 }
 0x1e9   : > { %v789_v4 = vpop.f32.mrf.mxu0 }
 0x1ea   : > { %v793_v5 = vadd.f32 %v789_v4, %v627_v3 }
 0x1eb   : > { %v1252_v6 = vpop.f32.mrf.mxu0 }
 0x1ec   : > { %v794_v7 = vmax.f32 %v793_v5, 0.0 }
 0x1ed   : > { %v879_v13 = vpop.f32.mrf.mxu0 }
 0x1ee   : > { %801 = vrot.lane.b32.xlu0 %v794_v7, %s1420_s22  ;;  %s961_s22 = scalar_lea.sflag [#allocation4], %s282_s9 }
 0x1ef   : > { %v1257_v14 = vpop.f32.mrf.mxu0 }
 0x1f2   : > { %795 = vrot.lane.b32.xlu0 %v794_v7, %s1421_s23  ;;  %s1349_s23 = scalar_lea.vmem %s975_s18, 128 }
 0x1f3   : > { %p1350_p8 = scmp.ne.s32.totalorder %s975_s18, %s1349_s23  ;;  %p1357_p12 = scmp.lt.s32.totalorder %s1355_s28, %s1349_s23 }
 0x1f5   : > { %p1351_p9 = pnand %p1350_p8, %p1501_p5  ;;  %p1358_p13 = por %p1357_p12, %p1356_p11 }
 0x1f7   : > { %p1352_p10 = pneg %p1351_p9 }
 0x1f9   : > { %p1359_p0 = pnand %p1358_p13, %p1352_p10 }
 0x260   : > { %v802_v10 = vpop.permute.xlu0 %801 }
 0x261   : > { %1259 = vmatpush3.msk.msra.mxu0 %vm803_vm3, %v802_v10 }
 0x262   : > { %1260 = vmatprep.subr.mxu0 %v1418_v0 }
 0x263   : > { %1261 = vmatpush3.msra.mxu0 %v794_v7 }
 0x264   : > { %v796_v12 = vpop.permute.xlu0 %795  ;;  %1262 = vmatprep.subr.mxu0 %v1418_v0 }
 0x265   : > { %1263 = vmatpush3.msk.msra.mxu0 %vm797_vm4, %v796_v12 }
 0x266   : > { %1265 = vmatmul.mubr.msk.f32.vlgmr.msra.gmra.mxu0 %vm883_vm5, %v289_v11 }
 0x326   : > { %v953_v16 = vpop.f32.mrf.mxu0 }
 0x327   : > { %v954_v17 = vadd.f32 %v953_v16, %v879_v13 }
 0x328   : > { %v1266_v18 = vpop.f32.mrf.mxu0 }
 0x329   : > { %v957_v19 = vadd.f32 %v954_v17, %v292_v15 }
 0x32b   : > { %v958_v20 = vmax.f32 %v957_v19, 0.0 }
 0x32d   : > { %959 = vst [vmem:[%s284_s17] sm:$0xff] %v958_v20 }
 0x32e   : > { %1362 = shalt.err (!%p1359_p0)
}
 0x32f   : > { %s1363_s13 = scalar_lea.hbm %s972_s21, 128  ;;  %s1367_s15 = scalar_lea.hbm %s1681_s7, 256 }
 0x330   : > { %p1364_p1 = scmp.ne.s32.totalorder %s972_s21, %s1363_s13  ;;  %p1368_p4 = scmp.lt.s32.totalorder %s972_s21, %s1681_s7 }
 0x331   : > { %p1369_p7 = scmp.lt.s32.totalorder %s1367_s15, %s1363_s13 }
 0x332   : > { %p1365_p2 = pnand %p1364_p1, %p1501_p5 }
 0x333   : > { %p1370_p6 = por %p1369_p7, %p1368_p4 }
 0x334   : > { %p1366_p3 = pneg %p1365_p2 }
 0x336   : > { %p1371_p8 = pnand %p1370_p6, %p1366_p3 }
 0x338   : > { %1374 = shalt.err (!%p1371_p8)
}
 0x339   : > { %1271 = dma.vmem_to_hbm [thread:$0]  (%p1501_p5), %s975_s18, 128, %s972_s21, %s961_s22  }
 0x33a PF: > { %p1283_p9 = scmp.ge.s32.totalorder %s1413_s27, 2  ;;  %s986_s19 = sand.u32 1, %s1401_s24  }
 0x33b   : > { %p1685_p10 = scmp.ne.s32.totalorder %s1683_s12, 0  ;;  %s987_s20 = scalar_lea.sflag [#allocation4], %s986_s19 }
 0x33d   : > { %p1278_p11 = pnand %p1283_p9, %p1685_p10 }
 0x33f   : > { %p1279_p12 = pneg %p1278_p11 }
 0x341   : > { %1396 = dma.done.wait (%p1279_p12), %s987_s20, 128  }
 0x342   : > { %1398 = vsyncadd (%p1279_p12), %s987_s20, 4294967168  ;;  %p18_p13 = scmp.ge.s32.totalorder %s1488_s30, 4   ;;  %s1686_s24 = smov %s1405_s25 }
 0x343   : > { %s1687_s25 = smov %s1409_s26  ;;  %s1688_s26 = smov %s1499_s10 }
 0x344   : > { %s1689_s27 = smov %s1488_s30  ;;  %20 = sbr.rel (!%p18_p13) target bundleno = 4 (0x4), region = 92 }
 0x349   :  { %992 = vsyncpa [#allocation3], 1 }
 0x34a   :  { %994 = vsyncpa [#allocation3 + $0x1], 1 }
 0x34b   :  { %995 = vsyncpa [#allocation4], 1 }
 0x34c   :  { %997 = vsyncpa [#allocation4 + $0x1], 1 }

</bundles_post_ra>
